<compile_context>
chip_gen: v7x
topology: tpu7x:2x2x1
jax: 0.10.0
libtpu: 0.0.40
codegen_flags: <defaults>
</compile_context>

<pallas_src>
import jax
import jax.numpy as jnp
from jax.experimental import pallas as pl
from jax.experimental.pallas import tpu as pltpu

# ---- module hyper-parameters (ReHU(d=0.1), lambda_=0.1) --------------------
D_REHU = 0.1
A_REHU = 1.0 / D_REHU          # 10.0
B_REHU = -D_REHU / 2.0         # -0.05
LAMBDA = 0.1


def _round_up(x, m):
    return ((x + m - 1) // m) * m


def _rehu(v):
    # ReHU: max(clamp(sign(v) * a/2 * v^2, 0, -b), v + b)
    # sign(v)*v^2 == v*|v|  (exact, incl. v == 0)
    quad = (0.5 * A_REHU) * v * jnp.abs(v)
    return jnp.maximum(jnp.clip(quad, 0.0, -B_REHU), v + B_REHU)


def _mylinear_kernel(in_ref, w_ref, out_ref):
    xin = in_ref[...]                                        # [TB, F]
    # Single fused matmul against the block weight (MXU, f32 accumulation).
    pre = jnp.dot(xin, w_ref[...], preferred_element_type=jnp.float32)
    # pre[:, :dim]  = z @ w2_z.T,  pre[:, dim:] = x @ w1_z.T
    # Subtracting lambda*input_ applies -lambda*x / -lambda*z to the right halves.
    pre = pre - LAMBDA * xin.astype(jnp.float32)
    out_ref[...] = _rehu(pre).astype(out_ref.dtype)


def my_linear_forward(input_, w1_z, w2_z, dim):
    """Pallas implementation of myLinear.forward.

    input_: [..., dim*(1+kdim)]   (x = input_[..., :dim], z = input_[..., dim:])
    w1_z:   [dim*kdim, dim]
    w2_z:   [dim, dim*kdim]
    """
    lead = input_.shape[:-1]
    F = input_.shape[-1]
    dt = input_.dtype

    # Block weight (built once per call; in a real model hoist/cache this so it
    # is not rebuilt on the hot path).
    #   out_lin[:, :dim]  = z @ w2_z.T   -> W[dim:, :dim] = w2_z.T
    #   out_lin[:, dim:]  = x @ w1_z.T   -> W[:dim, dim:] = w1_z.T
    W = jnp.zeros((F, F), dt)
    W = W.at[dim:, :dim].set(w2_z.T.astype(dt))
    W = W.at[:dim, dim:].set(w1_z.T.astype(dt))

    x2 = input_.reshape(-1, F)
    B = x2.shape[0]

    # Batch tile: multiple of 8 sublanes, capped at 256 rows (fits comfortably
    # in v7x's smaller VMEM: 2*2*256*F*4B + F*F*4B << 32 MiB for typical F).
    TB = min(256, _round_up(B, 8))
    Bp = _round_up(B, TB)
    if Bp != B:
        x2 = jnp.pad(x2, ((0, Bp - B), (0, 0)))

    out = pl.pallas_call(
        _mylinear_kernel,
        out_shape=jax.ShapeDtypeStruct((Bp, F), dt),
        grid=(Bp // TB,),
        in_specs=[
            pl.BlockSpec((TB, F), lambda i: (i, 0)),   # activations: tiled over batch
            pl.BlockSpec((F, F), lambda i: (0, 0)),    # block weight: resident
        ],
        out_specs=pl.BlockSpec((TB, F), lambda i: (i, 0)),  # lane-dense output
        compiler_params=pltpu.CompilerParams(
            dimension_semantics=("parallel",)),
    )(x2, W)

    if Bp != B:
        out = out[:B]
    return out.reshape(*lead, F)


# ---- reference: literal transcription of the PyTorch module ----------------
def _torch_rehu(v):
    return jnp.maximum(
        jnp.clip(jnp.sign(v) * (A_REHU / 2.0) * v * v, 0.0, -B_REHU),
        v + B_REHU)


def _reference_forward(input_, w1_z, w2_z, dim):
    x = input_[..., :dim]
    z = input_[..., dim:]
    z_out = _torch_rehu(x @ w1_z.T - LAMBDA * z)
    x_out = _torch_rehu(z @ w2_z.T - LAMBDA * x)
    return jnp.concatenate([x_out, z_out], axis=-1)


if __name__ == "__main__":
    # Small shapes consistent with the module: dim=32, kdim=4, batch=8.
    dim, kdim, B = 32, 4, 8
    zdim = dim * kdim

    key = jax.random.PRNGKey(0)
    k_in, k_w1, k_w2 = jax.random.split(key, 3)

    # Deterministic xavier_uniform_(gain=1.414) init.
    gain = 1.414
    bound1 = gain * (6.0 / (zdim + dim)) ** 0.5       # w1_z: (dim*kdim, dim)
    bound2 = gain * (6.0 / (dim + zdim)) ** 0.5       # w2_z: (dim, dim*kdim)
    w1_z = jax.random.uniform(k_w1, (zdim, dim), jnp.float32, -bound1, bound1)
    w2_z = jax.random.uniform(k_w2, (dim, zdim), jnp.float32, -bound2, bound2)

    input_ = jax.random.normal(k_in, (B, dim + zdim), jnp.float32)

    out = my_linear_forward(input_, w1_z, w2_z, dim)
    out = jax.block_until_ready(out)

    ref = _reference_forward(input_, w1_z, w2_z, dim)
    assert out.shape == (B, dim + zdim)
    assert jnp.allclose(out, ref, atol=1e-5, rtol=1e-5)

    print("KERNEL_OK")
</pallas_src>

<mosaic_0001>
module attributes {stable_mosaic.version = 11 : i64} {
  func.func @_mylinear_kernel(%arg0: i32, %arg1: memref<8x160xf32, #tpu.memory_space<vmem>>, %arg2: memref<160x160xf32, #tpu.memory_space<vmem>>, %arg3: memref<8x160xf32, #tpu.memory_space<vmem>>) attributes {dimension_semantics = [#tpu.dimension_semantics<parallel>], iteration_bounds = array<i64: 1>, scalar_prefetch = 0 : i64, scratch_operands = 0 : i64, tpu.core_type = #tpu.core_type<tc>, window_params = [{transform_indices = @transform_0, window_bounds = array<i64: 8, 160>}, {pipeline_mode = #tpu.pipeline_mode<synchronous>, transform_indices = @transform_1, window_bounds = array<i64: 160, 160>}, {transform_indices = @transform_2, window_bounds = array<i64: 8, 160>}]} {
    %c0 = arith.constant 0 : index
    %c0_0 = arith.constant 0 : index
    %0 = vector.load %arg1[%c0, %c0_0] : memref<8x160xf32, #tpu.memory_space<vmem>>, vector<8x160xf32>
    %c0_1 = arith.constant 0 : index
    %c0_2 = arith.constant 0 : index
    %1 = vector.load %arg2[%c0_1, %c0_2] : memref<160x160xf32, #tpu.memory_space<vmem>>, vector<160x160xf32>
    %cst = arith.constant dense<0.000000e+00> : vector<8x160xf32>
    %2 = tpu.matmul %0, %1, %cst {dimension_numbers = #tpu.dot_dimension_numbers<[1], [0], [0], [1], [0, 0, 1, 1], [], []>} : vector<8x160xf32>, vector<160x160xf32>, vector<8x160xf32> -> vector<8x160xf32>
    %cst_3 = arith.constant 1.000000e-01 : f32
    %3 = vector.broadcast %cst_3 : f32 to vector<8x160xf32>
    %4 = arith.mulf %3, %0 : vector<8x160xf32>
    %5 = arith.subf %2, %4 : vector<8x160xf32>
    %cst_4 = arith.constant 5.000000e+00 : f32
    %6 = vector.broadcast %cst_4 : f32 to vector<8x160xf32>
    %7 = arith.mulf %6, %5 : vector<8x160xf32>
    %8 = math.absf %5 : vector<8x160xf32>
    %9 = arith.mulf %7, %8 : vector<8x160xf32>
    %cst_5 = arith.constant 0.000000e+00 : f32
    %cst_6 = arith.constant 5.000000e-02 : f32
    %10 = vector.broadcast %cst_5 : f32 to vector<8x160xf32>
    %11 = arith.maximumf %10, %9 : vector<8x160xf32>
    %12 = vector.broadcast %cst_6 : f32 to vector<8x160xf32>
    %13 = arith.minimumf %12, %11 : vector<8x160xf32>
    %cst_7 = arith.constant -5.000000e-02 : f32
    %14 = vector.broadcast %cst_7 : f32 to vector<8x160xf32>
    %15 = arith.addf %5, %14 : vector<8x160xf32>
    %16 = arith.maximumf %13, %15 : vector<8x160xf32>
    %c0_8 = arith.constant 0 : index
    %c0_9 = arith.constant 0 : index
    %17 = vector.load %arg3[%c0_8, %c0_9] : memref<8x160xf32, #tpu.memory_space<vmem>>, vector<8x160xf32>
    tpu.vector_store %arg3[%c0_8, %c0_9], %16 {strides = array<i32>} : memref<8x160xf32, #tpu.memory_space<vmem>>, vector<8x160xf32>,
    return
  }
  func.func @transform_0(%arg0: i32) -> (i32, i32) {
    %c0_i32 = arith.constant 0 : i32
    %c0_i32_0 = arith.constant 0 : i32
    return %arg0, %c0_i32 : i32, i32
  }
  func.func @transform_1(%arg0: i32) -> (i32, i32) {
    %c0_i32 = arith.constant 0 : i32
    %c0_i32_0 = arith.constant 0 : i32
    %c0_i32_1 = arith.constant 0 : i32
    return %c0_i32, %c0_i32_0 : i32, i32
  }
  func.func @transform_2(%arg0: i32) -> (i32, i32) {
    %c0_i32 = arith.constant 0 : i32
    %c0_i32_0 = arith.constant 0 : i32
    return %arg0, %c0_i32 : i32, i32
  }
}

</mosaic_0001>

<bundles_post_ra>
// kernel: tpu_custom_call.1
= control target key start
LH: loop header
LB: loop body
LE: loop exit
PB: predicated region body
PF: predicated region fallthrough
CT: control target
= control target key end

     0   :  { %7 = vsyncpa [#allocation3], 0  ;;  %s374_s0 = inlined_call_operand.hbm [shape: f32[8,160], index: 0, kind: input, shape index: {}]   ;;  %s375_s1 = inlined_call_operand.hbm [shape: f32[160,160], index: 1, kind: input, shape index: {}]   ;;  %s376_s2 = inlined_call_operand.hbm [shape: f32[8,160], index: 2, kind: output, shape index: {}]  }
   0x1   :  { %8 = vsyncpa [#allocation6], 0 }
   0x2   :  { %9 = vsyncpa [#allocation4], 0  ;;  %s309_s9 = smov [#allocation2]   ;;  %s310_s11 = smov [#allocation5]  }
   0x3   :  { %s16_s10 = sshll.u32 %s309_s9, 4  ;;  %s25_s12 = sshll.u32 %s310_s11, 4  ;;  %s17_s10 = int_to_ptr.vmem [resolvable:$true] %s16_s10  ;;  %s329_s12 = int_to_ptr.vmem [resolvable:$true] %s25_s12 }
   0x4   :  { %s237_s15 = scalar_lea.hbm %s374_s0, 256 }
   0x5   :  { %p238_p0 = scmp.ne.s32.totalorder %s374_s0, %s237_s15  ;;  %p241_p1 = scmp.lt.u32.totalorder %s237_s15, %s374_s0 }
   0x7   :  { %p243_p2 = pnand %p241_p1, %p238_p0 }
   0x9   :  { %246 = shalt.err (!%p243_p2)
}
   0xa   :  { %s247_s20 = scalar_lea.vmem %s17_s10, 256  ;;  %p252_p4 = scmp.lt.s32.totalorder %s17_s10, %s17_s10 }
   0xb   :  { %p248_p3 = scmp.ne.s32.totalorder %s17_s10, %s247_s20  ;;  %p253_p5 = scmp.lt.s32.totalorder %s247_s20, %s247_s20 }
   0xd   :  { %p254_p6 = por %p253_p5, %p252_p4 }
   0xf   :  { %p255_p7 = pnand %p254_p6, %p248_p3 }
  0x11   :  { %258 = shalt.err (!%p255_p7)
}
  0x12   :  { %19 = dma.hbm_to_vmem [thread:$0]  %s374_s0, 256, %s17_s10, [#allocation3]  }
  0x13   :  { %s259_s25 = scalar_lea.hbm %s375_s1, 5120 }
  0x14   :  { %p260_p8 = scmp.ne.s32.totalorder %s375_s1, %s259_s25  ;;  %p263_p9 = scmp.lt.u32.totalorder %s259_s25, %s375_s1 }
  0x16   :  { %p265_p10 = pnand %p263_p9, %p260_p8 }
  0x18   :  { %268 = shalt.err (!%p265_p10)
}
  0x19   :  { %s269_s30 = scalar_lea.vmem %s329_s12, 5120  ;;  %p274_p12 = scmp.lt.s32.totalorder %s329_s12, %s329_s12 }
  0x1a   :  { %p270_p11 = scmp.ne.s32.totalorder %s329_s12, %s269_s30  ;;  %p275_p13 = scmp.lt.s32.totalorder %s269_s30, %s269_s30 }
  0x1c   :  { %p276_p0 = por %p275_p13, %p274_p12 }
  0x1e   :  { %p277_p1 = pnand %p276_p0, %p270_p11 }
  0x20   :  { %280 = shalt.err (!%p277_p1)
}
  0x21   :  { %s311_s0 = smov 256   ;;  %s312_s3 = smov 16  }
  0x22   :  { %31 = dma.hbm_to_vmem [thread:$0]  %s375_s1, 5120, %s329_s12, [#allocation6], %s311_s0, %s311_s0, %s312_s3  }
  0x23   :  { %303 = dma.done.wait [#allocation3], 256  }
  0x24   :  { %304 = vsyncadd [#allocation3], 4294967040 }
  0x25   :  { %305 = dma.done.wait [#allocation6], 5120  }
  0x26   :  { %306 = vsyncadd [#allocation6], 4294962176  ;;  %v41_v0 = vld [vmem:[#allocation5 + $0x8] sm:$0xff]  ;;  %v43_v1 = vld [vmem:[#allocation5 + $0x18] sm:$0xff]  ;;  %vm80_vm0 = vcmask 261120   ;;  %s313_s1 = smov [#allocation7]  }
  0x27   :  { %v40_v2 = vld [vmem:[#allocation5] sm:$0xff]  ;;  %v192_v3 = vpack.c.bf16 %v43_v1, %v41_v0  ;;  %v42_v4 = vld [vmem:[#allocation5 + $0x10] sm:$0xff]  ;;  %v45_v5 = vld [vmem:[#allocation5 + $0x28] sm:$0xff]  ;;  %s181_s6 = sshll.u32 %s313_s1, 4  ;;  %s182_s6 = int_to_ptr.vmem [resolvable:$true] %s181_s6 }
  0x28   :  { %v47_v6 = vld [vmem:[#allocation5 + $0x38] sm:$0xff]  ;;  %v194_v7 = vpack.c.bf16 %v42_v4, %v40_v2  ;;  %v44_v9 = vld [vmem:[#allocation5 + $0x20] sm:$0xff]  ;;  %v46_v10 = vld [vmem:[#allocation5 + $0x30] sm:$0xff]  ;;  %s281_s7 = scalar_lea.vmem %s182_s6, 256  ;;  %p286_p3 = scmp.lt.s32.totalorder %s182_s6, %s182_s6 }
  0x29   :  { %v196_v8 = vpack.c.bf16 %v47_v6, %v45_v5  ;;  %v49_v11 = vld [vmem:[#allocation5 + $0x48] sm:$0xff]  ;;  %193 = vmatprep.subr.bf16.mxu0 %v192_v3  ;;  %v51_v12 = vld [vmem:[#allocation5 + $0x58] sm:$0xff]  ;;  %v198_v13 = vpack.c.bf16 %v46_v10, %v44_v9  ;;  %v48_v15 = vld [vmem:[#allocation5 + $0x40] sm:$0xff]  ;;  %p282_p2 = scmp.ne.s32.totalorder %s182_s6, %s281_s7  ;;  %p287_p4 = scmp.lt.s32.totalorder %s281_s7, %s281_s7 }
  0x2a   :  { %195 = vmatpush1.bf16.msra.mxu0 %v194_v7  ;;  %v200_v14 = vpack.c.bf16 %v51_v12, %v49_v11  ;;  %v50_v16 = vld [vmem:[#allocation5 + $0x50] sm:$0xff]  ;;  %v53_v17 = vld [vmem:[#allocation5 + $0x68] sm:$0xff]  ;;  %v55_v18 = vld [vmem:[#allocation5 + $0x78] sm:$0xff] }
  0x2b   :  { %197 = vmatprep.subr.bf16.mxu0 %v196_v8  ;;  %v202_v19 = vpack.c.bf16 %v50_v16, %v48_v15  ;;  %v204_v20 = vpack.c.bf16 %v55_v18, %v53_v17  ;;  %v52_v21 = vld [vmem:[#allocation5 + $0x60] sm:$0xff]  ;;  %v54_v22 = vld [vmem:[#allocation5 + $0x70] sm:$0xff]  ;;  %v57_v23 = vld [vmem:[#allocation5 + $0x88] sm:$0xff]  ;;  %p288_p5 = por %p287_p4, %p286_p3 }
  0x2c   :  { %v59_v24 = vld [vmem:[#allocation5 + $0x98] sm:$0xff]  ;;  %v206_v25 = vpack.c.bf16 %v54_v22, %v52_v21  ;;  %v56_v27 = vld [vmem:[#allocation5 + $0x80] sm:$0xff]  ;;  %v58_v28 = vld [vmem:[#allocation5 + $0x90] sm:$0xff] }
  0x2d   :  { %v208_v26 = vpack.c.bf16 %v59_v24, %v57_v23  ;;  %v39_v29 = vld [vmem:[#allocation2 + $0x8] sm:$0xff]  ;;  %v61_v30 = vld [vmem:[#allocation5 + $0xa8] sm:$0xff]  ;;  %v210_v32 = vpack.c.bf16 %v58_v28, %v56_v27  ;;  %v60_v34 = vld [vmem:[#allocation5 + $0xa0] sm:$0xff]  ;;  %p289_p6 = pnand %p288_p5, %p282_p2 }
  0x2e   :  { %199 = vmatpush1.bf16.msra.mxu0 %v198_v13  ;;  %v63_v31 = vld [vmem:[#allocation5 + $0xb8] sm:$0xff]  ;;  %191 = vmatprep.mubr.msk.f32.mxu0 %vm80_vm0, %v39_v29  ;;  %v62_v35 = vld [vmem:[#allocation5 + $0xb0] sm:$0xff]  ;;  %v65_v36 = vld [vmem:[#allocation5 + $0xc8] sm:$0xff]  ;;  %v156_v63 = vmul.f32 0.1, %v39_v29 }
  0x2f   :  { %201 = vmatprep.subr.bf16.mxu0 %v200_v14  ;;  %v212_v33 = vpack.c.bf16 %v63_v31, %v61_v30  ;;  %v67_v37 = vld [vmem:[#allocation5 + $0xd8] sm:$0xff]  ;;  %v214_v38 = vpack.c.bf16 %v62_v35, %v60_v34  ;;  %v64_v40 = vld [vmem:[#allocation5 + $0xc0] sm:$0xff]  ;;  %v66_v41 = vld [vmem:[#allocation5 + $0xd0] sm:$0xff] }
  0x30   :  { %v216_v39 = vpack.c.bf16 %v67_v37, %v65_v36  ;;  %v69_v42 = vld [vmem:[#allocation5 + $0xe8] sm:$0xff]  ;;  %v71_v43 = vld [vmem:[#allocation5 + $0xf8] sm:$0xff]  ;;  %v218_v44 = vpack.c.bf16 %v66_v41, %v64_v40  ;;  %v68_v46 = vld [vmem:[#allocation5 + $0xe0] sm:$0xff] }
  0x31   :  { %v220_v45 = vpack.c.bf16 %v71_v43, %v69_v42  ;;  %v70_v47 = vld [vmem:[#allocation5 + $0xf0] sm:$0xff]  ;;  %v73_v48 = vld [vmem:[#allocation5 + $0x108] sm:$0xff]  ;;  %v75_v49 = vld [vmem:[#allocation5 + $0x118] sm:$0xff] }
  0x32   :  { %203 = vmatpush1.bf16.msra.mxu0 %v202_v19  ;;  %v222_v50 = vpack.c.bf16 %v70_v47, %v68_v46  ;;  %v224_v51 = vpack.c.bf16 %v75_v49, %v73_v48  ;;  %v72_v52 = vld [vmem:[#allocation5 + $0x100] sm:$0xff]  ;;  %v74_v53 = vld [vmem:[#allocation5 + $0x110] sm:$0xff]  ;;  %v77_v54 = vld [vmem:[#allocation5 + $0x128] sm:$0xff] }
  0x33   :  { %205 = vmatprep.subr.bf16.mxu0 %v204_v20  ;;  %v79_v55 = vld [vmem:[#allocation5 + $0x138] sm:$0xff]  ;;  %v226_v56 = vpack.c.bf16 %v74_v53, %v72_v52  ;;  %v76_v58 = vld [vmem:[#allocation5 + $0x120] sm:$0xff]  ;;  %v78_v59 = vld [vmem:[#allocation5 + $0x130] sm:$0xff] }
  0x34   :  { %v228_v57 = vpack.c.bf16 %v79_v55, %v77_v54  ;;  %v230_v60 = vpack.c.bf16 %v78_v59, %v76_v58  ;;  %v38_v61 = vld [vmem:[#allocation2] sm:$0xff] }
  0x35   :  { %v155_v62 = vmul.f32 0.1, %v38_v61 }
  0x36   :  { %207 = vmatpush1.bf16.msra.mxu0 %v206_v25 }
  0x37   :  { %209 = vmatprep.subr.bf16.mxu0 %v208_v26 }
  0x3a   :  { %211 = vmatpush1.bf16.msra.mxu0 %v210_v32 }
  0x3b   :  { %213 = vmatprep.subr.bf16.mxu0 %v212_v33 }
  0x3e   :  { %215 = vmatpush1.bf16.msra.mxu0 %v214_v38 }
  0x3f   :  { %217 = vmatprep.subr.bf16.mxu0 %v216_v39 }
  0x42   :  { %219 = vmatpush1.bf16.msra.mxu0 %v218_v44 }
  0x43   :  { %221 = vmatprep.subr.bf16.mxu0 %v220_v45 }
  0x46   :  { %223 = vmatpush1.bf16.msra.mxu0 %v222_v50 }
  0x47   :  { %225 = vmatprep.subr.bf16.mxu0 %v224_v51 }
  0x4a   :  { %227 = vmatpush1.bf16.msra.mxu0 %v226_v56 }
  0x4b   :  { %229 = vmatprep.subr.bf16.mxu0 %v228_v57 }
  0x4e   :  { %231 = vmatpush1.bf16.msra.mxu0 %v230_v60 }
  0x51   :  { %149 = vmatmul.mubr.f32.vlgmr.msra.gmra.mrb[0].mxu0 %v38_v61 }
 0x124   :  { %v150_v0 = vpop.f32.mrb[0].mxu0 }
 0x125   :  { %v157_v1 = vsub.f32 %v150_v0, %v155_v62  ;;  %v152_v2 = vpop.f32.mrb[1].mxu0 }
 0x126   :  { %v158_v3 = vsub.f32 %v152_v2, %v156_v63 }
 0x127   :  { %v159_v4 = vmul.f32 5.0, %v157_v1  ;;  %v161_v5 = vand.u32 2147483647, %v157_v1  ;;  %v169_v12 = vadd.f32 -0.05, %v157_v1 }
 0x128   :  { %v160_v6 = vmul.f32 5.0, %v158_v3  ;;  %v162_v7 = vand.u32 2147483647, %v158_v3  ;;  %v170_v15 = vadd.f32 -0.05, %v158_v3 }
 0x129   :  { %v163_v8 = vmul.f32 %v161_v5, %v159_v4 }
 0x12a   :  { %v164_v9 = vmul.f32 %v162_v7, %v160_v6 }
 0x12b   :  { %v165_v10 = vmax.f32 %v163_v8, 0.0 }
 0x12c   :  { %v166_v11 = vmax.f32 %v164_v9, 0.0 }
 0x12d   :  { %v167_v13 = vmin.f32 %v165_v10, 0.05 }
 0x12e   :  { %v168_v14 = vmin.f32 %v166_v11, 0.05 }
 0x12f   :  { %v171_v16 = vmax.f32 %v167_v13, %v169_v12 }
 0x130   :  { %v172_v17 = vmax.f32 %v168_v14, %v170_v15 }
 0x131   :  { %173 = vst [vmem:[#allocation7] sm:$0xff] %v171_v16 }
 0x132   :  { %174 = vst.msk [vmem:[#allocation7 + $0x8] sm:$0xff] %vm80_vm0, %v172_v17 }
 0x133   :  { %292 = shalt.err (!%p289_p6)
}
 0x134   :  { %s293_s10 = scalar_lea.hbm %s376_s2, 256 }
 0x135   :  { %p294_p7 = scmp.ne.s32.totalorder %s376_s2, %s293_s10  ;;  %p297_p8 = scmp.lt.u32.totalorder %s293_s10, %s376_s2 }
 0x137   :  { %p299_p9 = pnand %p297_p8, %p294_p7 }
 0x139   :  { %302 = shalt.err (!%p299_p9)
}
 0x13a   :  { %184 = dma.vmem_to_hbm [thread:$0]  %s182_s6, 256, %s376_s2, [#allocation4]  }
 0x13b   :  { %307 = dma.done.wait [#allocation4], 256  }
 0x13c   :  { %308 = vsyncadd [#allocation4], 4294967040 }
 0x13d   :  { %188 = vsyncpa [#allocation3], 1 }
 0x13e   :  { %189 = vsyncpa [#allocation6], 1 }
 0x13f   :  { %190 = vsyncpa [#allocation4], 1 }

</bundles_post_ra>
